<compile_context>
chip_gen: v7x
topology: tpu7x:2x2x1
jax: 0.10.0
libtpu: 0.0.40
codegen_flags: <defaults>
</compile_context>

<pallas_src>
import functools

import jax
import jax.numpy as jnp
from jax.experimental import pallas as pl
from jax.experimental.pallas import tpu as pltpu


# ---------------------------------------------------------------------------
# Fused parser-head kernel: MLP(+ReLU) -> arc biaffine + label biaffine
# ---------------------------------------------------------------------------
def _parser_head_kernel(x_ref, wmlp_ref, bmlp_ref, warc_ref, wlbld_ref,
                        arc_ref, lbl_ref, feat_ref, arcm_ref, lblT_ref,
                        *, seg, rel_size, head_tile, seq_len):
    Ap, Aep, Lqp = seg                       # padded segment widths (multiples of 128)
    R, ts, S = rel_size, head_tile, seq_len
    nh = S // ts
    F = Ap + Aep + 2 * Lqp
    ht = pl.program_id(1)

    cl = (((1,), (1,)), ((), ()))            # contract last dims: A @ B^T (no materialized .T)
    cs = (((1,), (0,)), ((), ()))            # standard A @ B
    c1, c2, c3 = Ap, Ap + Aep, Ap + Aep + Lqp

    # ---- per-batch work (head-tile invariant), cached in VMEM ----
    @pl.when(ht == 0)
    def _():
        x = x_ref[0]                                                     # (S, D)
        y = jax.lax.dot_general(x, wmlp_ref[...], cs,
                                preferred_element_type=jnp.float32)
        feat = jnp.maximum(y + bmlp_ref[...], 0.0).astype(feat_ref.dtype)  # (S, F)
        feat_ref[...] = feat.reshape(nh, ts, F)

        arc_dep_ext = feat[:, c1:c2]                                     # (S, Aep) lane-aligned
        arcm_ref[...] = jax.lax.dot_general(
            arc_dep_ext, warc_ref[...], cl,
            preferred_element_type=jnp.float32).astype(arcm_ref.dtype)   # (S, Ap)

        lbl_dep_ext = feat[:, c3:]                                       # (S, Lqp) lane-aligned
        for r in range(R):                   # R small MXU matmuls, once per batch element
            lblT_ref[r] = jax.lax.dot_general(
                lbl_dep_ext, wlbld_ref[r], cs,
                preferred_element_type=jnp.float32).astype(lblT_ref.dtype)  # (S, Lqp)

    # ---- per head-tile work: two lane-dense MXU matmuls, no regroup/copy ----
    fh = feat_ref[ht]                                                    # (ts, F)
    arc_head = fh[:, :Ap]                                                # (ts, Ap)
    lbl_head_ext = fh[:, c2:c3]                                          # (ts, Lqp)

    arc = jax.lax.dot_general(arc_head, arcm_ref[...], cl,
                              preferred_element_type=jnp.float32)        # (ts, S)
    arc_ref[0] = arc.astype(arc_ref.dtype)

    t_all = lblT_ref[...].reshape(R * S, Lqp)                            # leading-dim merge
    lbl = jax.lax.dot_general(lbl_head_ext, t_all, cl,
                              preferred_element_type=jnp.float32)        # (ts, R*S) lane-dense
    lbl_ref[0] = lbl.astype(lbl_ref.dtype)


# ---------------------------------------------------------------------------
# Wrapper helpers
# ---------------------------------------------------------------------------
def _round_up(x, m):
    return ((x + m - 1) // m) * m


def _vmem_budget_bytes():
    """Per-core VMEM budget: physical capacity minus headroom, clamped to <= 100 MiB."""
    try:
        cap = int(pltpu.get_tpu_info().vmem_capacity_bytes)
    except Exception:
        cap = 64 << 20                      # safe fallback for any generation
    if cap <= 0:
        cap = 64 << 20
    return min(int(cap * 0.84), 100 << 20)  # v5e/v6e ~100 MiB, v7x ~53 MiB


def _pick_head_tile(S, *, R, F, Ap, Aep, Lqp, D, cbytes, budget):
    """Largest head tile whose double-buffered out blocks + resident buffers fit the budget."""
    fixed = cbytes * (S * F + S * Ap + R * S * Lqp)                   # per-batch VMEM caches
    fixed += 2 * cbytes * (S * D + D * F + Ap * Aep + R * Lqp * Lqp)  # double-buffered inputs
    fixed += 2 * 4 * F                                                # f32 bias
    per_row = 2 * 4 * S * (1 + R)                                     # double-buffered f32 outs
    cands = sorted({c for c in (S, 1024, 512, 256, 128, 64, 32, 16, 8)
                    if 0 < c <= S and S % c == 0}, reverse=True)
    if not cands:
        return S
    for c in cands:
        if fixed + per_row * c <= budget:
            return c
    return cands[-1]


def _build_fused_params(p, compute_dtype):
    """Fuse arc/lbl MLP weights, pad every segment to 128 lanes, add relu-surviving 1-columns."""
    A, L, R = p["arc_size"], p["label_size"], p["rel_size"]
    D = p["mlp_arc_w"].shape[1]
    Ap = _round_up(A, 128)                      # arc-head segment
    Aep = _round_up(A + 1, 128)                 # arc-dep(+1) segment
    Lqp = _round_up(L + 1, 128)                 # lbl-head(+1) and lbl-dep(+1) segments
    F = Ap + Aep + 2 * Lqp
    c1, c2, c3 = Ap, Ap + Aep, Ap + Aep + Lqp

    w = jnp.zeros((F, D), jnp.float32)
    b = jnp.zeros((F,), jnp.float32)
    w = w.at[0:A].set(p["mlp_arc_w"][:A]);        b = b.at[0:A].set(p["mlp_arc_b"][:A])
    w = w.at[c1:c1 + A].set(p["mlp_arc_w"][A:]);  b = b.at[c1:c1 + A].set(p["mlp_arc_b"][A:])
    b = b.at[c1 + A].set(1.0)                     # relu(1)=1 -> arc biaffine bias column
    w = w.at[c2:c2 + L].set(p["mlp_lbl_w"][:L]);  b = b.at[c2:c2 + L].set(p["mlp_lbl_b"][:L])
    b = b.at[c2 + L].set(1.0)                     # lbl head bias column
    w = w.at[c3:c3 + L].set(p["mlp_lbl_w"][L:]);  b = b.at[c3:c3 + L].set(p["mlp_lbl_b"][L:])
    b = b.at[c3 + L].set(1.0)                     # lbl dep bias column

    warc = jnp.zeros((Ap, Aep), jnp.float32).at[:A, :A + 1].set(p["arc_biaf_w"])
    w3 = p["lbl_biaf_w"].reshape(R, L + 1, L + 1)                     # [r, q(head), p(dep)]
    wlbld = jnp.zeros((R, Lqp, Lqp), jnp.float32)
    wlbld = wlbld.at[:, :L + 1, :L + 1].set(jnp.transpose(w3, (0, 2, 1)))  # [r, p, q]

    cd = compute_dtype
    return (w.T.astype(cd), b.reshape(1, -1), warc.astype(cd), wlbld.astype(cd),
            dict(Ap=Ap, Aep=Aep, Lqp=Lqp, F=F))


# ---------------------------------------------------------------------------
# Forward pass
# ---------------------------------------------------------------------------
def parser_model_forward(bert_out, params, *, compute_dtype=jnp.bfloat16,
                         transpose_label=True):
    B, S, D = bert_out.shape
    A, L, R = params["arc_size"], params["label_size"], params["rel_size"]

    wmlp_t, b_fused, warc, wlbld, seg = _build_fused_params(params, compute_dtype)
    Ap, Aep, Lqp, F = seg["Ap"], seg["Aep"], seg["Lqp"], seg["F"]
    cb = jnp.dtype(compute_dtype).itemsize

    budget = _vmem_budget_bytes()
    ts = _pick_head_tile(S, R=R, F=F, Ap=Ap, Aep=Aep, Lqp=Lqp, D=D,
                         cbytes=cb, budget=budget)
    nh = S // ts

    kern = functools.partial(_parser_head_kernel, seg=(Ap, Aep, Lqp),
                             rel_size=R, head_tile=ts, seq_len=S)

    flops = int(2 * B * (S * D * F + S * Aep * Ap + S * S * Ap
                         + R * S * Lqp * Lqp + S * R * S * Lqp))
    bytes_accessed = int(cb * (B * S * D + D * F + Ap * Aep + R * Lqp * Lqp)
                         + 4 * F + 4 * B * S * S * (1 + R))

    arc_score, lbl_raw = pl.pallas_call(
        kern,
        out_shape=(jax.ShapeDtypeStruct((B, S, S), jnp.float32),
                   jax.ShapeDtypeStruct((B, S, R * S), jnp.float32)),
        grid=(B, nh),
        in_specs=[
            pl.BlockSpec((1, S, D), lambda b, h: (b, 0, 0)),           # bert_out
            pl.BlockSpec((D, F), lambda b, h: (0, 0)),                 # fused MLP weight^T
            pl.BlockSpec((1, F), lambda b, h: (0, 0)),                 # fused MLP bias (f32)
            pl.BlockSpec((Ap, Aep), lambda b, h: (0, 0)),              # arc biaffine weight
            pl.BlockSpec((R, Lqp, Lqp), lambda b, h: (0, 0, 0)),       # label weights [r, p, q]
        ],
        out_specs=(
            pl.BlockSpec((1, ts, S), lambda b, h: (b, h, 0)),          # arc scores
            pl.BlockSpec((1, ts, R * S), lambda b, h: (b, h, 0)),      # label scores, lane-dense
        ),
        scratch_shapes=[
            pltpu.VMEM((nh, ts, F), compute_dtype),    # fused features, head-tile major
            pltpu.VMEM((S, Ap), compute_dtype),        # dep-side arc projection
            pltpu.VMEM((R, S, Lqp), compute_dtype),    # dep-side label projection T[r, i, q]
        ],
        compiler_params=pltpu.CompilerParams(
            dimension_semantics=("parallel", "arbitrary"),
            vmem_limit_bytes=budget),
        cost_estimate=pl.CostEstimate(flops=flops, transcendentals=0,
                                      bytes_accessed=bytes_accessed),
    )(bert_out.astype(compute_dtype), wmlp_t, b_fused, warc, wlbld)

    lbl_raw = lbl_raw.reshape(B, S, R, S)              # metadata-only reshape
    if transpose_label:
        # Module semantics: [b, head, dep, rel].  A consumer that can take [b, head, rel, dep]
        # should pass transpose_label=False and skip this HBM re-stream of the label tensor.
        return arc_score, jnp.transpose(lbl_raw, (0, 1, 3, 2))
    return arc_score, lbl_raw


# ---------------------------------------------------------------------------
# Pure-JAX reference (correctness check)
# ---------------------------------------------------------------------------
def ref_forward(bert_out, p):
    def mlp(x, w, b):
        return jnp.maximum(jnp.einsum("bsd,od->bso", x, w) + b, 0.0)

    A, L, R = p["arc_size"], p["label_size"], p["rel_size"]
    B, S, _ = bert_out.shape
    arc_feat = mlp(bert_out, p["mlp_arc_w"], p["mlp_arc_b"])
    lbl_feat = mlp(bert_out, p["mlp_lbl_w"], p["mlp_lbl_b"])
    arc_head, arc_dep = arc_feat[..., :A], arc_feat[..., A:]
    lbl_head, lbl_dep = lbl_feat[..., :L], lbl_feat[..., L:]
    ones = jnp.ones((B, S, 1), jnp.float32)
    d1 = jnp.concatenate([arc_dep, ones], -1)
    arc_score = jnp.einsum("bjq,qp,bip->bji", arc_head, p["arc_biaf_w"], d1)
    ld = jnp.concatenate([lbl_dep, ones], -1)
    lh = jnp.concatenate([lbl_head, ones], -1)
    W = p["lbl_biaf_w"].reshape(R, L + 1, L + 1)
    lbl_score = jnp.einsum("bjq,rqp,bip->bjir", lh, W, ld)
    return arc_score, lbl_score


if __name__ == "__main__":
    key = jax.random.PRNGKey(0)
    B, S, D = 2, 8, 32
    arc_size, label_size, rel_size = 16, 16, 4

    ks = jax.random.split(key, 7)
    params = dict(
        arc_size=arc_size, label_size=label_size, rel_size=rel_size,
        mlp_arc_w=0.1 * jax.random.normal(ks[0], (2 * arc_size, D), jnp.float32),
        mlp_arc_b=0.1 * jax.random.normal(ks[1], (2 * arc_size,), jnp.float32),
        mlp_lbl_w=0.1 * jax.random.normal(ks[2], (2 * label_size, D), jnp.float32),
        mlp_lbl_b=0.1 * jax.random.normal(ks[3], (2 * label_size,), jnp.float32),
        arc_biaf_w=0.1 * jax.random.normal(ks[4], (arc_size, arc_size + 1), jnp.float32),
        lbl_biaf_w=0.1 * jax.random.normal(
            ks[5], (rel_size * (label_size + 1), label_size + 1), jnp.float32),
    )
    bert_out = jax.random.normal(ks[6], (B, S, D), jnp.float32)

    arc_ref, lbl_refv = ref_forward(bert_out, params)

    # exact-math path (f32 operands) -> tight tolerance
    arc32, lbl32 = parser_model_forward(bert_out, params, compute_dtype=jnp.float32)
    jax.block_until_ready((arc32, lbl32))
    assert arc32.shape == (B, S, S) and lbl32.shape == (B, S, S, rel_size)
    assert float(jnp.max(jnp.abs(arc32 - arc_ref))) < 1e-4
    assert float(jnp.max(jnp.abs(lbl32 - lbl_refv))) < 1e-4

    # production path (bf16 operands, f32 accumulation) -> bf16-level tolerance
    arc16, lbl16 = parser_model_forward(bert_out, params)   # bf16 default
    jax.block_until_ready((arc16, lbl16))
    assert arc16.shape == (B, S, S) and lbl16.shape == (B, S, S, rel_size)
    arc_tol = 8e-2 * (1.0 + float(jnp.max(jnp.abs(arc_ref))))
    lbl_tol = 8e-2 * (1.0 + float(jnp.max(jnp.abs(lbl_refv))))
    assert float(jnp.max(jnp.abs(arc16 - arc_ref))) < arc_tol
    assert float(jnp.max(jnp.abs(lbl16 - lbl_refv))) < lbl_tol

    print("KERNEL_OK")
</pallas_src>

<mosaic_0001>
module attributes {stable_mosaic.version = 11 : i64} {
  func.func @_parser_head_kernel(%arg0: i32, %arg1: i32, %arg2: memref<1x8x32xf32, #tpu.memory_space<vmem>>, %arg3: memref<32x512xf32, #tpu.memory_space<vmem>>, %arg4: memref<1x512xf32, #tpu.memory_space<vmem>>, %arg5: memref<128x128xf32, #tpu.memory_space<vmem>>, %arg6: memref<4x128x128xf32, #tpu.memory_space<vmem>>, %arg7: memref<1x8x8xf32, #tpu.memory_space<vmem>>, %arg8: memref<1x8x32xf32, #tpu.memory_space<vmem>>, %arg9: memref<1x8x512xf32, #tpu.memory_space<vmem>>, %arg10: memref<8x128xf32, #tpu.memory_space<vmem>>, %arg11: memref<4x8x128xf32, #tpu.memory_space<vmem>>) attributes {dimension_semantics = [#tpu.dimension_semantics<parallel>, #tpu.dimension_semantics<arbitrary>], iteration_bounds = array<i64: 2, 1>, scalar_prefetch = 0 : i64, scratch_operands = 3 : i64, tpu.core_type = #tpu.core_type<tc>, window_params = [{transform_indices = @transform_0, window_bounds = array<i64: 1, 8, 32>}, {pipeline_mode = #tpu.pipeline_mode<synchronous>, transform_indices = @transform_1, window_bounds = array<i64: 32, 512>}, {pipeline_mode = #tpu.pipeline_mode<synchronous>, transform_indices = @transform_2, window_bounds = array<i64: 1, 512>}, {pipeline_mode = #tpu.pipeline_mode<synchronous>, transform_indices = @transform_3, window_bounds = array<i64: 128, 128>}, {pipeline_mode = #tpu.pipeline_mode<synchronous>, transform_indices = @transform_4, window_bounds = array<i64: 4, 128, 128>}, {transform_indices = @transform_5, window_bounds = array<i64: 1, 8, 8>}, {transform_indices = @transform_6, window_bounds = array<i64: 1, 8, 32>}]} {
    %c0_i32 = arith.constant 0 : i32
    %0 = arith.cmpi eq, %arg1, %c0_i32 : i32
    %1 = arith.extui %0 : i1 to i32
    %c0_i32_0 = arith.constant 0 : i32
    %2 = arith.cmpi ne, %1, %c0_i32_0 : i32
    scf.if %2 {
      %c0_14 = arith.constant 0 : index
      %c0_15 = arith.constant 0 : index
      %c0_16 = arith.constant 0 : index
      %19 = vector.load %arg2[%c0_14, %c0_15, %c0_16] : memref<1x8x32xf32, #tpu.memory_space<vmem>>, vector<1x8x32xf32>
      %20 = vector.shape_cast %19 : vector<1x8x32xf32> to vector<8x32xf32>
      %c0_17 = arith.constant 0 : index
      %c0_18 = arith.constant 0 : index
      %21 = vector.load %arg3[%c0_17, %c0_18] : memref<32x512xf32, #tpu.memory_space<vmem>>, vector<32x512xf32>
      %cst_19 = arith.constant dense<0.000000e+00> : vector<8x512xf32>
      %22 = tpu.matmul %20, %21, %cst_19 {dimension_numbers = #tpu.dot_dimension_numbers<[1], [0], [0], [1], [0, 0, 1, 1], [], []>} : vector<8x32xf32>, vector<32x512xf32>, vector<8x512xf32> -> vector<8x512xf32>
      %c0_20 = arith.constant 0 : index
      %c0_21 = arith.constant 0 : index
      %23 = vector.load %arg4[%c0_20, %c0_21] : memref<1x512xf32, #tpu.memory_space<vmem>>, vector<1x512xf32>
      %24 = vector.broadcast %23 : vector<1x512xf32> to vector<8x512xf32>
      %25 = arith.addf %22, %24 : vector<8x512xf32>
      %cst_22 = arith.constant 0.000000e+00 : f32
      %26 = vector.broadcast %cst_22 : f32 to vector<8x512xf32>
      %27 = arith.maximumf %25, %26 : vector<8x512xf32>
      %28 = vector.shape_cast %27 : vector<8x512xf32> to vector<1x8x512xf32>
      %c0_23 = arith.constant 0 : index
      %c0_24 = arith.constant 0 : index
      %c0_25 = arith.constant 0 : index
      %29 = vector.load %arg9[%c0_23, %c0_24, %c0_25] : memref<1x8x512xf32, #tpu.memory_space<vmem>>, vector<1x8x512xf32>
      tpu.vector_store %arg9[%c0_23, %c0_24, %c0_25], %28 {strides = array<i32>} : memref<1x8x512xf32, #tpu.memory_space<vmem>>, vector<1x8x512xf32>,
      %30 = vector.extract_strided_slice %27 {offsets = [0, 128], sizes = [8, 128], strides = [1, 1]} : vector<8x512xf32> to vector<8x128xf32>
      %c0_26 = arith.constant 0 : index
      %c0_27 = arith.constant 0 : index
      %31 = vector.load %arg5[%c0_26, %c0_27] : memref<128x128xf32, #tpu.memory_space<vmem>>, vector<128x128xf32>
      %cst_28 = arith.constant dense<0.000000e+00> : vector<8x128xf32>
      %32 = tpu.matmul %30, %31, %cst_28 {dimension_numbers = #tpu.dot_dimension_numbers<[1], [1], [0], [0], [0, 0, 1, 0], [], []>} : vector<8x128xf32>, vector<128x128xf32>, vector<8x128xf32> -> vector<8x128xf32>
      %c0_29 = arith.constant 0 : index
      %c0_30 = arith.constant 0 : index
      %33 = vector.load %arg10[%c0_29, %c0_30] : memref<8x128xf32, #tpu.memory_space<vmem>>, vector<8x128xf32>
      tpu.vector_store %arg10[%c0_29, %c0_30], %32 {strides = array<i32>} : memref<8x128xf32, #tpu.memory_space<vmem>>, vector<8x128xf32>,
      %34 = vector.extract_strided_slice %27 {offsets = [0, 384], sizes = [8, 128], strides = [1, 1]} : vector<8x512xf32> to vector<8x128xf32>
      %c0_31 = arith.constant 0 : index
      %c0_32 = arith.constant 0 : index
      %c0_33 = arith.constant 0 : index
      %35 = vector.load %arg6[%c0_31, %c0_32, %c0_33] : memref<4x128x128xf32, #tpu.memory_space<vmem>>, vector<1x128x128xf32>
      %36 = vector.shape_cast %35 : vector<1x128x128xf32> to vector<128x128xf32>
      %cst_34 = arith.constant dense<0.000000e+00> : vector<8x128xf32>
      %37 = tpu.matmul %34, %36, %cst_34 {dimension_numbers = #tpu.dot_dimension_numbers<[1], [0], [0], [1], [0, 0, 1, 1], [], []>} : vector<8x128xf32>, vector<128x128xf32>, vector<8x128xf32> -> vector<8x128xf32>
      %c0_35 = arith.constant 0 : index
      %c0_36 = arith.constant 0 : index
      %c0_37 = arith.constant 0 : index
      %38 = vector.load %arg11[%c0_35, %c0_36, %c0_37] : memref<4x8x128xf32, #tpu.memory_space<vmem>>, vector<1x8x128xf32>
      %39 = vector.shape_cast %38 : vector<1x8x128xf32> to vector<8x128xf32>
      %40 = vector.shape_cast %37 : vector<8x128xf32> to vector<1x8x128xf32>
      tpu.vector_store %arg11[%c0_35, %c0_36, %c0_37], %40 {strides = array<i32>} : memref<4x8x128xf32, #tpu.memory_space<vmem>>, vector<1x8x128xf32>,
      %c1 = arith.constant 1 : index
      %c0_38 = arith.constant 0 : index
      %c0_39 = arith.constant 0 : index
      %41 = vector.load %arg6[%c1, %c0_38, %c0_39] : memref<4x128x128xf32, #tpu.memory_space<vmem>>, vector<1x128x128xf32>
      %42 = vector.shape_cast %41 : vector<1x128x128xf32> to vector<128x128xf32>
      %cst_40 = arith.constant dense<0.000000e+00> : vector<8x128xf32>
      %43 = tpu.matmul %34, %42, %cst_40 {dimension_numbers = #tpu.dot_dimension_numbers<[1], [0], [0], [1], [0, 0, 1, 1], [], []>} : vector<8x128xf32>, vector<128x128xf32>, vector<8x128xf32> -> vector<8x128xf32>
      %c1_41 = arith.constant 1 : index
      %c0_42 = arith.constant 0 : index
      %c0_43 = arith.constant 0 : index
      %44 = vector.load %arg11[%c1_41, %c0_42, %c0_43] : memref<4x8x128xf32, #tpu.memory_space<vmem>>, vector<1x8x128xf32>
      %45 = vector.shape_cast %44 : vector<1x8x128xf32> to vector<8x128xf32>
      %46 = vector.shape_cast %43 : vector<8x128xf32> to vector<1x8x128xf32>
      tpu.vector_store %arg11[%c1_41, %c0_42, %c0_43], %46 {strides = array<i32>} : memref<4x8x128xf32, #tpu.memory_space<vmem>>, vector<1x8x128xf32>,
      %c2 = arith.constant 2 : index
      %c0_44 = arith.constant 0 : index
      %c0_45 = arith.constant 0 : index
      %47 = vector.load %arg6[%c2, %c0_44, %c0_45] : memref<4x128x128xf32, #tpu.memory_space<vmem>>, vector<1x128x128xf32>
      %48 = vector.shape_cast %47 : vector<1x128x128xf32> to vector<128x128xf32>
      %cst_46 = arith.constant dense<0.000000e+00> : vector<8x128xf32>
      %49 = tpu.matmul %34, %48, %cst_46 {dimension_numbers = #tpu.dot_dimension_numbers<[1], [0], [0], [1], [0, 0, 1, 1], [], []>} : vector<8x128xf32>, vector<128x128xf32>, vector<8x128xf32> -> vector<8x128xf32>
      %c2_47 = arith.constant 2 : index
      %c0_48 = arith.constant 0 : index
      %c0_49 = arith.constant 0 : index
      %50 = vector.load %arg11[%c2_47, %c0_48, %c0_49] : memref<4x8x128xf32, #tpu.memory_space<vmem>>, vector<1x8x128xf32>
      %51 = vector.shape_cast %50 : vector<1x8x128xf32> to vector<8x128xf32>
      %52 = vector.shape_cast %49 : vector<8x128xf32> to vector<1x8x128xf32>
      tpu.vector_store %arg11[%c2_47, %c0_48, %c0_49], %52 {strides = array<i32>} : memref<4x8x128xf32, #tpu.memory_space<vmem>>, vector<1x8x128xf32>,
      %c3 = arith.constant 3 : index
      %c0_50 = arith.constant 0 : index
      %c0_51 = arith.constant 0 : index
      %53 = vector.load %arg6[%c3, %c0_50, %c0_51] : memref<4x128x128xf32, #tpu.memory_space<vmem>>, vector<1x128x128xf32>
      %54 = vector.shape_cast %53 : vector<1x128x128xf32> to vector<128x128xf32>
      %cst_52 = arith.constant dense<0.000000e+00> : vector<8x128xf32>
      %55 = tpu.matmul %34, %54, %cst_52 {dimension_numbers = #tpu.dot_dimension_numbers<[1], [0], [0], [1], [0, 0, 1, 1], [], []>} : vector<8x128xf32>, vector<128x128xf32>, vector<8x128xf32> -> vector<8x128xf32>
      %c3_53 = arith.constant 3 : index
      %c0_54 = arith.constant 0 : index
      %c0_55 = arith.constant 0 : index
      %56 = vector.load %arg11[%c3_53, %c0_54, %c0_55] : memref<4x8x128xf32, #tpu.memory_space<vmem>>, vector<1x8x128xf32>
      %57 = vector.shape_cast %56 : vector<1x8x128xf32> to vector<8x128xf32>
      %58 = vector.shape_cast %55 : vector<8x128xf32> to vector<1x8x128xf32>
      tpu.vector_store %arg11[%c3_53, %c0_54, %c0_55], %58 {strides = array<i32>} : memref<4x8x128xf32, #tpu.memory_space<vmem>>, vector<1x8x128xf32>,
    } else {
    }
    %3 = arith.index_cast %arg1 : i32 to index
    %c0 = arith.constant 0 : index
    %c0_1 = arith.constant 0 : index
    %4 = vector.load %arg9[%3, %c0, %c0_1] : memref<1x8x512xf32, #tpu.memory_space<vmem>>, vector<1x8x512xf32>
    %5 = vector.shape_cast %4 : vector<1x8x512xf32> to vector<8x512xf32>
    %6 = vector.extract_strided_slice %5 {offsets = [0, 0], sizes = [8, 128], strides = [1, 1]} : vector<8x512xf32> to vector<8x128xf32>
    %7 = vector.extract_strided_slice %5 {offsets = [0, 256], sizes = [8, 128], strides = [1, 1]} : vector<8x512xf32> to vector<8x128xf32>
    %c0_2 = arith.constant 0 : index
    %c0_3 = arith.constant 0 : index
    %8 = vector.load %arg10[%c0_2, %c0_3] : memref<8x128xf32, #tpu.memory_space<vmem>>, vector<8x128xf32>
    %cst = arith.constant dense<0.000000e+00> : vector<8x8xf32>
    %9 = tpu.matmul %6, %8, %cst {dimension_numbers = #tpu.dot_dimension_numbers<[1], [1], [0], [0], [0, 0, 1, 0], [], []>} : vector<8x128xf32>, vector<8x128xf32>, vector<8x8xf32> -> vector<8x8xf32>
    %c0_4 = arith.constant 0 : index
    %c0_5 = arith.constant 0 : index
    %c0_6 = arith.constant 0 : index
    %10 = vector.load %arg7[%c0_4, %c0_5, %c0_6] : memref<1x8x8xf32, #tpu.memory_space<vmem>>, vector<1x8x8xf32>
    %11 = vector.shape_cast %10 : vector<1x8x8xf32> to vector<8x8xf32>
    %12 = vector.shape_cast %9 : vector<8x8xf32> to vector<1x8x8xf32>
    tpu.vector_store %arg7[%c0_4, %c0_5, %c0_6], %12 {strides = array<i32>} : memref<1x8x8xf32, #tpu.memory_space<vmem>>, vector<1x8x8xf32>,
    %c0_7 = arith.constant 0 : index
    %c0_8 = arith.constant 0 : index
    %c0_9 = arith.constant 0 : index
    %13 = vector.load %arg11[%c0_7, %c0_8, %c0_9] : memref<4x8x128xf32, #tpu.memory_space<vmem>>, vector<4x8x128xf32>
    %14 = vector.shape_cast %13 : vector<4x8x128xf32> to vector<32x128xf32>
    %cst_10 = arith.constant dense<0.000000e+00> : vector<8x32xf32>
    %15 = tpu.matmul %7, %14, %cst_10 {dimension_numbers = #tpu.dot_dimension_numbers<[1], [1], [0], [0], [0, 0, 1, 0], [], []>} : vector<8x128xf32>, vector<32x128xf32>, vector<8x32xf32> -> vector<8x32xf32>
    %c0_11 = arith.constant 0 : index
    %c0_12 = arith.constant 0 : index
    %c0_13 = arith.constant 0 : index
    %16 = vector.load %arg8[%c0_11, %c0_12, %c0_13] : memref<1x8x32xf32, #tpu.memory_space<vmem>>, vector<1x8x32xf32>
    %17 = vector.shape_cast %16 : vector<1x8x32xf32> to vector<8x32xf32>
    %18 = vector.shape_cast %15 : vector<8x32xf32> to vector<1x8x32xf32>
    tpu.vector_store %arg8[%c0_11, %c0_12, %c0_13], %18 {strides = array<i32>} : memref<1x8x32xf32, #tpu.memory_space<vmem>>, vector<1x8x32xf32>,
    return
  }
  func.func @transform_0(%arg0: i32, %arg1: i32) -> (i32, i32, i32) {
    %c0_i32 = arith.constant 0 : i32
    %c0_i32_0 = arith.constant 0 : i32
    %c0_i32_1 = arith.constant 0 : i32
    return %arg0, %c0_i32, %c0_i32_0 : i32, i32, i32
  }
  func.func @transform_1(%arg0: i32, %arg1: i32) -> (i32, i32) {
    %c0_i32 = arith.constant 0 : i32
    %c0_i32_0 = arith.constant 0 : i32
    %c0_i32_1 = arith.constant 0 : i32
    return %c0_i32, %c0_i32_0 : i32, i32
  }
  func.func @transform_2(%arg0: i32, %arg1: i32) -> (i32, i32) {
    %c0_i32 = arith.constant 0 : i32
    %c0_i32_0 = arith.constant 0 : i32
    %c0_i32_1 = arith.constant 0 : i32
    return %c0_i32, %c0_i32_0 : i32, i32
  }
  func.func @transform_3(%arg0: i32, %arg1: i32) -> (i32, i32) {
    %c0_i32 = arith.constant 0 : i32
    %c0_i32_0 = arith.constant 0 : i32
    %c0_i32_1 = arith.constant 0 : i32
    return %c0_i32, %c0_i32_0 : i32, i32
  }
  func.func @transform_4(%arg0: i32, %arg1: i32) -> (i32, i32, i32) {
    %c0_i32 = arith.constant 0 : i32
    %c0_i32_0 = arith.constant 0 : i32
    %c0_i32_1 = arith.constant 0 : i32
    %c0_i32_2 = arith.constant 0 : i32
    return %c0_i32, %c0_i32_0, %c0_i32_1 : i32, i32, i32
  }
  func.func @transform_5(%arg0: i32, %arg1: i32) -> (i32, i32, i32) {
    %c0_i32 = arith.constant 0 : i32
    %c0_i32_0 = arith.constant 0 : i32
    return %arg0, %arg1, %c0_i32 : i32, i32, i32
  }
  func.func @transform_6(%arg0: i32, %arg1: i32) -> (i32, i32, i32) {
    %c0_i32 = arith.constant 0 : i32
    %c0_i32_0 = arith.constant 0 : i32
    return %arg0, %arg1, %c0_i32 : i32, i32, i32
  }
}

</mosaic_0001>

<bundles_post_ra>
// kernel: tpu_custom_call.1
= control target key start
LH: loop header
LB: loop body
LE: loop exit
PB: predicated region body
PF: predicated region fallthrough
CT: control target
= control target key end

     0   :  { %s2552_s0 = inlined_call_operand.hbm [shape: f32[2,8,32], index: 0, kind: input, shape index: {}]   ;;  %s2553_s1 = inlined_call_operand.hbm [shape: f32[32,512], index: 1, kind: input, shape index: {}]   ;;  %s2554_s2 = inlined_call_operand.vmem [shape: f32[1,512], index: 2, kind: input, shape index: {}]   ;;  %s2555_s3 = inlined_call_operand.hbm [shape: f32[128,128], index: 3, kind: input, shape index: {}]   ;;  %s2556_s4 = inlined_call_operand.hbm [shape: f32[4,128,128], index: 4, kind: input, shape index: {}]   ;;  %s2557_s5 = inlined_call_operand.hbm [shape: f32[2,8,8], index: 5, kind: output, shape index: {0}]   ;;  %s2558_s6 = inlined_call_operand.hbm [shape: f32[2,8,32], index: 6, kind: output, shape index: {1}]  }
   0x1   :  { %2565 = sst [smem:[#allocation23_spill]] %s2553_s1 }
   0x2   :  { %12 = vsyncpa [#allocation6], 0 }
   0x3   :  { %14 = vsyncpa [#allocation6 + $0x1], 0 }
   0x4   :  { %15 = vsyncpa [#allocation9], 0 }
   0x5   :  { %16 = vsyncpa [#allocation12], 0 }
   0x6   :  { %17 = vsyncpa [#allocation7], 0 }
   0x7   :  { %19 = vsyncpa [#allocation7 + $0x1], 0 }
   0x8   :  { %20 = vsyncpa [#allocation15], 0 }
   0x9   :  { %22 = vsyncpa [#allocation15 + $0x1], 0  ;;  %s2147_s21 = smov 0   ;;  %s2149_s22 = smov 0  }
   0xa   :  { %s2151_s23 = smov 0   ;;  %s2153_s24 = smov 0  }
   0xb   :  { %s2155_s25 = smov 0   ;;  %s2157_s26 = smov 0  }
   0xc LB: > { %2566 = sst [smem:[#allocation21_spill]] %s2077_s21  ;;  %s1307_s27 = sadd.s32 4294967295, %s2097_s26   ;;  %s2097_s26 = sphi %s2157_s26, %s28_s26   ;;  %s2093_s25 = sphi %s2155_s25, %s2591_s25   ;;  %s2089_s24 = sphi %s2153_s24, %s2590_s24   ;;  %s2085_s23 = sphi %s2151_s23, %s2589_s23   ;;  %s2081_s22 = sphi %s2149_s22, %s2588_s22   ;;  %s2077_s21 = sphi %s2147_s21, %s2587_s21  }
   0xd   : > { %s1308_s28 = sadd.s32 4294967294, %s2097_s26   ;;  %p60_p0 = scmp.ne.s32.totalorder %s2081_s22, %s2077_s21 }
   0xe   : > { %p2181_p1 = scmp.eq.s32.totalorder %s1307_s27, 0  ;;  %p2185_p2 = scmp.eq.s32.totalorder %s1307_s27, 1 }
   0xf   : > { %p176_p3 = scmp.eq.s32.totalorder %s1308_s28, 1  ;;  %p1309_p5 = scmp.ge.s32.totalorder %s2097_s26, 1 }
  0x10   : > { %s2567_s29 = scalar_select %p2181_p1, 1, 0 }
  0x11   : > { %s2568_s30 = scalar_select %p2185_p2, 1, 0 }
  0x12   : > { %p2191_p4 = por %p2181_p1, %p60_p0  ;;  %p2196_p6 = por %p176_p3, %p60_p0 }
  0x13   : > { %p211_p7 = scmp.lt.s32.totalorder %s2097_s26, 3  ;;  %s2099_s10 = smov [#allocation8]  }
  0x14   : > { %s2569_s7 = scalar_select %p2191_p4, 1, 0 }
  0x15   : > { %s2570_s8 = scalar_select %p2196_p6, 1, 0 }
  0x16   : > { %p2201_p8 = pnand %p1309_p5, %p211_p7  ;;  %s223_s11 = sshll.u32 %s2099_s10, 4  ;;  %s2205_s11 = int_to_ptr.vmem [resolvable:$true] %s223_s11 }
  0x17   : > { %2571 = sst [smem:[#allocation22_spill]] %s2570_s8  ;;  %s2100_s13 = smov [#allocation10]  }
  0x18   : > { %s2572_s9 = scalar_select %p2201_p8, 1, 0 }
  0x19   : > { %p1774_p9 = pneg %p2201_p8  ;;  %s239_s14 = sshll.u32 %s2100_s13, 4  ;;  %s2216_s14 = int_to_ptr.vmem [resolvable:$true] %s239_s14 }
  0x1a   : > { %s2574_s1 = sld [smem:[#allocation23_spill]] }
  0x1b   : > { %p2212_p11 = pnand %p1774_p9, %p2181_p1 }
  0x1d   : > { %p2226_p13 = pneg %p2212_p11 }
  0x20   : > { %s1861_s17 = scalar_lea.hbm %s2574_s1, 2048 }
  0x21   : > { %p1862_p12 = scmp.ne.s32.totalorder %s2574_s1, %s1861_s17  ;;  %p1868_p5 = scmp.lt.u32.totalorder %s1861_s17, %s2574_s1 }
  0x23   : > { %p1864_p0 = pnand %p2226_p13, %p1862_p12 }
  0x25   : > { %p1865_p3 = pneg %p1864_p0 }
  0x27   : > { %p1870_p7 = pnand %p1868_p5, %p1865_p3 }
  0x29   : > { %1873 = shalt.err (!%p1870_p7)
}
  0x2a   : > { %s1874_s10 = scalar_lea.vmem %s2205_s11, 2048  ;;  %p1882_p1 = scmp.lt.s32.totalorder %s2205_s11, %s2205_s11 }
  0x2b   : > { %p1875_p9 = scmp.ne.s32.totalorder %s2205_s11, %s1874_s10  ;;  %p1883_p4 = scmp.lt.s32.totalorder %s1874_s10, %s1874_s10 }
  0x2d   : > { %p1877_p10 = pnand %p1875_p9, %p2226_p13  ;;  %p1884_p12 = por %p1883_p4, %p1882_p1 }
  0x2f   : > { %p1878_p6 = pneg %p1877_p10 }
  0x31   : > { %p1885_p0 = pnand %p1884_p12, %p1878_p6 }
  0x33   : > { %1888 = shalt.err (!%p1885_p0)
}
  0x34   : > { %s2101_s13 = smov 512   ;;  %s2102_s15 = smov 32  }
  0x35   : > { %1777 = dma.hbm_to_vmem [thread:$0]  (!%p2212_p11), %s2574_s1, 2048, %s2205_s11, [#allocation9], %s2101_s13, %s2101_s13, %s2102_s15  }
  0x36   : > { %s1889_s27 = scalar_lea.hbm %s2555_s3, 2048 }
  0x37   : > { %p1890_p1 = scmp.ne.s32.totalorder %s2555_s3, %s1889_s27  ;;  %p1896_p10 = scmp.lt.u32.totalorder %s1889_s27, %s2555_s3 }
  0x39   : > { %p1892_p4 = pnand %p1890_p1, %p2226_p13 }
  0x3b   : > { %p1893_p6 = pneg %p1892_p4 }
  0x3d   : > { %p1898_p3 = pnand %p1896_p10, %p1893_p6 }
  0x3f   : > { %1901 = shalt.err (!%p1898_p3)
}
  0x40   : > { %s1902_s11 = scalar_lea.vmem %s2216_s14, 2048  ;;  %p1910_p12 = scmp.lt.s32.totalorder %s2216_s14, %s2216_s14 }
  0x41   : > { %p1903_p5 = scmp.ne.s32.totalorder %s2216_s14, %s1902_s11  ;;  %p1911_p0 = scmp.lt.s32.totalorder %s1902_s11, %s1902_s11 }
  0x43   : > { %p1905_p7 = pnand %p1903_p5, %p2226_p13  ;;  %p1912_p1 = por %p1911_p0, %p1910_p12 }
  0x45   : > { %p1906_p9 = pneg %p1905_p7 }
  0x47   : > { %p1913_p4 = pnand %p1912_p1, %p1906_p9 }
  0x49   : > { %1916 = shalt.err (!%p1913_p4)
}
  0x4a   : > { %s2103_s8 = smov 128   ;;  %s2104_s21 = smov 8  }
  0x4b   : > { %1780 = dma.hbm_to_vmem [thread:$0]  (!%p2212_p11), %s2555_s3, 2048, %s2216_s14, [#allocation9], %s2103_s8, %s2103_s8, %s2104_s21  }
  0x4c   : > { %s2105_s16 = smov [#allocation11]   ;;  %s1917_s27 = scalar_lea.hbm %s2556_s4, 8192 }
  0x4d   : > { %s252_s17 = sshll.u32 %s2105_s16, 4  ;;  %p1918_p6 = scmp.ne.s32.totalorder %s2556_s4, %s1917_s27  ;;  %s253_s17 = int_to_ptr.vmem [resolvable:$true] %s252_s17 }
  0x4e   : > { %p1924_p5 = scmp.lt.u32.totalorder %s1917_s27, %s2556_s4 }
  0x4f   : > { %p1920_p10 = pnand %p1918_p6, %p2226_p13 }
  0x51   : > { %p1921_p3 = pneg %p1920_p10 }
  0x53   : > { %p1926_p7 = pnand %p1924_p5, %p1921_p3 }
  0x55   : > { %1929 = shalt.err (!%p1926_p7)
}
  0x56   : > { %s1930_s14 = scalar_lea.vmem %s253_s17, 8192  ;;  %p1938_p1 = scmp.lt.s32.totalorder %s253_s17, %s253_s17 }
  0x57   : > { %p1931_p9 = scmp.ne.s32.totalorder %s253_s17, %s1930_s14  ;;  %p1939_p4 = scmp.lt.s32.totalorder %s1930_s14, %s1930_s14 }
  0x59   : > { %p1933_p12 = pnand %p1931_p9, %p2226_p13  ;;  %p1940_p8 = por %p1939_p4, %p1938_p1 }
  0x5b   : > { %p1934_p0 = pneg %p1933_p12 }
  0x5d   : > { %p1941_p2 = pnand %p1940_p8, %p1934_p0 }
  0x5f   : > { %1944 = shalt.err (!%p1941_p2)
}
  0x60   : > { %1783 = dma.hbm_to_vmem [thread:$0]  (!%p2212_p11), %s2556_s4, 8192, %s253_s17, [#allocation12], %s2103_s8, %s2103_s8, %s2104_s21  }
  0x61   : > { %s40_s1 = sadd.s32 1, %s2093_s25  ;;  %s47_s20 = sadd.s32 1, %s2085_s23 }
  0x62   : > { %p42_p8 = scmp.ge.s32.totalorder %s40_s1, 2  ;;  %p54_p2 = scmp.ne.s32.totalorder %s2085_s23, %s2081_s22 }
  0x63   : > { %p55_p13 = scmp.eq.s32.totalorder %s2097_s26, 0  ;;  %p2577_p10 = scmp.ne.s32.totalorder %s2568_s30, 0 }
  0x64   : > { %s2593_s1 = smov (%p42_p8, %s40_s1), 0  ;;  %p1798_p11 = scmp.lt.s32.totalorder %s2097_s26, 2 }
  0x65   : > { %p2295_p6 = por %p55_p13, %p54_p2  ;;  %p2301_p3 = por %p2577_p10, %p54_p2 }
  0x66   : > { %s44_s18 = ssub.s32 %s2093_s25, %s2593_s1  ;;  %s266_s8 = sand.u32 1, %s2085_s23  }
  0x67   : > { %p45_p5 = scmp.eq.s32.totalorder %s44_s18, 0  ;;  %s1314_s21 = sshll.u32 %s266_s8, 3 }
  0x68   : > { %s1315_s19 = sshll.u32 %s2093_s25, 7  ;;  %s270_s30 = scalar_lea.vmem [#allocation5], %s1314_s21 }
  0x69   : > { %s2310_s17 = scalar_select %p45_p5, %s2085_s23, %s47_s20  }
  0x6a   : > { %s2316_s10 = scalar_lea.hbm %s2552_s0, %s1315_s19  ;;  %s277_s11 = sshll.u32 %s270_s30, 4  ;;  %s2318_s11 = int_to_ptr.vmem [resolvable:$true] %s277_s11 }
  0x6b   : > { %p2322_p7 = pnand %p1798_p11, %p2295_p6  ;;  %s267_s13 = scalar_lea.sflag [#allocation6], %s266_s8 }
  0x6c   : > { %s1945_s15 = scalar_lea.hbm %s2316_s10, 128  ;;  %s1950_s21 = scalar_lea.hbm %s2552_s0, 256 }
  0x6d   : > { %p1946_p9 = scmp.ne.s32.totalorder %s2316_s10, %s1945_s15  ;;  %p1947_p12 = pneg %p2322_p7 }
  0x6e   : > { %p1951_p4 = scmp.lt.u32.totalorder %s2316_s10, %s2552_s0  ;;  %p1952_p8 = scmp.lt.u32.totalorder %s1950_s21, %s1945_s15 }
  0x6f   : > { %p1948_p0 = pnand %p1947_p12, %p1946_p9  ;;  %p1954_p13 = scmp.lt.u32.totalorder %s1945_s15, %s2316_s10 }
  0x70   : > { %p1953_p2 = por %p1952_p8, %p1951_p4 }
  0x71   : > { %p1949_p1 = pneg %p1948_p0 }
  0x72   : > { %p1955_p6 = por %p1954_p13, %p1953_p2 }
  0x74   : > { %p1956_p10 = pnand %p1955_p6, %p1949_p1 }
  0x76   : > { %1959 = shalt.err (!%p1956_p10)
}
  0x77   : > { %s1960_s8 = scalar_lea.vmem %s2318_s11, 128  ;;  %s2106_s27 = smov [#allocation5]  }
  0x78   : > { %p1961_p11 = scmp.ne.s32.totalorder %s2318_s11, %s1960_s8  ;;  %s1965_s28 = sshll.u32 %s2106_s27, 4  ;;  %s1966_s28 = int_to_ptr.vmem [resolvable:$false] %s1965_s28 }
  0x79   : > { %s1967_s30 = scalar_lea.vmem %s1966_s28, 256  ;;  %p1968_p0 = scmp.lt.s32.totalorder %s2318_s11, %s1966_s28 }
  0x7a   : > { %p1963_p5 = pnand %p1961_p11, %p1947_p12  ;;  %p1969_p4 = scmp.lt.s32.totalorder %s1967_s30, %s1960_s8 }
  0x7c   : > { %p1964_p9 = pneg %p1963_p5  ;;  %p1970_p8 = por %p1969_p4, %p1968_p0 }
  0x7e   : > { %p1971_p2 = pnand %p1970_p8, %p1964_p9 }
  0x80   : > { %1974 = shalt.err (!%p1971_p2)
}
  0x81   : > { %1787 = dma.hbm_to_vmem [thread:$0]  (!%p2322_p7), %s2316_s10, 128, %s2318_s11, %s267_s13  }
  0x82   : > { %p2580_p1 = scmp.ne.s32.totalorder %s2572_s9, 0 }
  0x83   : > { %s2354_s15 = sand.u32 (!%p2580_p1), 1, %s2081_s22   ;;  %p2581_p12 = scmp.ne.s32.totalorder (!%p2580_p1), %s2569_s7, 0 }
  0x84   : > { %286 = sbr.rel (%p2580_p1) target bundleno = 893 (0x37d), region = 40  ;;  %s2357_s20 = sshll.u32 (!%p2580_p1), %s2354_s15, 3 }
  0x85   : > { %s289_s18 = scalar_lea.sflag (!%p2580_p1), [#allocation6], %s2354_s15  ;;  %s292_s21 = scalar_lea.vmem (!%p2580_p1), [#allocation5], %s2357_s20 }
  0x8b   : > { %2056 = dma.done.wait (%p2581_p12), %s289_s18, 128  }
  0x8c   : > { %2058 = vsyncadd (%p2581_p12), %s289_s18, 4294967168  ;;  %p2582_p7 = scmp.ne.s32.totalorder %s2567_s29, 0 }
  0x8e   : > { %2060 = dma.done.wait (%p2582_p7), [#allocation9], 4096  }
  0x8f   : > { %2062 = vsyncadd (%p2582_p7), [#allocation9], 4294963200 }
  0x90   : > { %2064 = dma.done.wait (%p2582_p7), [#allocation12], 8192  }
  0x91   : > { %2066 = vsyncadd (%p2582_p7), [#allocation12], 4294959104  ;;  %v2107_v0 = vmov 0.0   ;;  %v2108_v1 = vmov 0.0|0.0   ;;  %v344_v2 = vld [vmem:[#allocation8 + $0x8] sm:$0xff]  ;;  %v343_v4 = vld [vmem:[#allocation8] sm:$0xff] }
  0x92   : > { %449 = vmatprep.mubr.f32.mxu0 %v2107_v0  ;;  %1654 = vmatprep.subr.bf16.mxu1 %v2108_v1  ;;  %v348_v3 = vld [vmem:[#allocation8 + $0x28] sm:$0xff]  ;;  %v347_v6 = vld [vmem:[#allocation8 + $0x20] sm:$0xff]  ;;  %v346_v13 = vld [vmem:[#allocation8 + $0x18] sm:$0xff]  ;;  %vm381_vm0 = vcmask 261120   ;;  %vm2109_vm1 = vmmov 0   ;;  %s1327_s9 = sshll.u32 %s2089_s24, 7 }
  0x93   : > { %v1614_v5 = vpack.c.bf16 %v348_v3, %v344_v2  ;;  %v352_v7 = vld [vmem:[#allocation8 + $0x48] sm:$0xff]  ;;  %v1616_v9 = vpack.c.bf16 %v347_v6, %v343_v4  ;;  %v351_v11 = vld [vmem:[#allocation8 + $0x40] sm:$0xff]  ;;  %v350_v14 = vld [vmem:[#allocation8 + $0x38] sm:$0xff]  ;;  %1490 = vmatprep.mubr.msk.f32.mxu1 %vm2109_vm1, %v2107_v0  ;;  %s330_s10 = scalar_lea.vmem [#allocation13], %s2357_s20  ;;  %vm1052_vm2 = vcmask 64512   ;;  %s2470_s12 = scalar_lea.hbm %s2557_s5, %s1327_s9 }
  0x94   : > { %v356_v8 = vld [vmem:[#allocation8 + $0x68] sm:$0xff]  ;;  %v355_v12 = vld [vmem:[#allocation8 + $0x60] sm:$0xff]  ;;  %v1622_v16 = vpack.c.bf16 %v350_v14, %v346_v13  ;;  %v345_v17 = vld [vmem:[#allocation8 + $0x10] sm:$0xff]  ;;  %v361_v13 = vlaneseq  ;;  %s1150_s11 = sshll.u32 %s330_s10, 4  ;;  %s1131_s19 = scalar_lea.sflag [#allocation7], %s2354_s15  ;;  %s2472_s11 = int_to_ptr.vmem [resolvable:$true] %s1150_s11 }
  0x95   : > { %v1618_v10 = vpack.c.bf16 %v356_v8, %v352_v7  ;;  %1615 = vmatprep.subr.bf16.mxu0 %v1614_v5  ;;  %v1620_v15 = vpack.c.bf16 %v355_v12, %v351_v11  ;;  %v349_v18 = vld [vmem:[#allocation8 + $0x30] sm:$0xff]  ;;  %v354_v19 = vld [vmem:[#allocation8 + $0x58] sm:$0xff]  ;;  %v622_v26 = vld [vmem:[#allocation11] sm:$0xff]  ;;  %s1975_s8 = scalar_lea.vmem %s2472_s11, 128  ;;  %s2110_s27 = smov [#allocation13]  }
  0x96   : > { %1617 = vmatpush1.bf16.msra.mxu0 %v1616_v9  ;;  %v358_v20 = vld [vmem:[#allocation8 + $0x78] sm:$0xff]  ;;  %v1624_v22 = vpack.c.bf16 %v349_v18, %v345_v17  ;;  %v353_v24 = vld [vmem:[#allocation8 + $0x50] sm:$0xff]  ;;  %v623_v27 = vld [vmem:[#allocation11 + $0x8] sm:$0xff]  ;;  %v2401_v14 = vshrl.u32 %v361_v13, 7  ;;  %p1976_p13 = scmp.ne.s32.totalorder %s2472_s11, %s1975_s8  ;;  %s1979_s28 = sshll.u32 %s2110_s27, 4  ;;  %s1980_s28 = int_to_ptr.vmem [resolvable:$false] %s1979_s28 }
  0x97   : > { %1619 = vmatprep.subr.bf16.mxu0 %v1618_v10  ;;  %v342_v21 = vld [vmem:[%s292_s21] sm:$0xff]  ;;  %v1626_v23 = vpack.c.bf16 %v358_v20, %v354_v19  ;;  %v1655_v30 = vpack.c.bf16 %v623_v27, %v622_v26  ;;  %v626_v33 = vld [vmem:[#allocation11 + $0x20] sm:$0xff]  ;;  %v627_v34 = vld [vmem:[#allocation11 + $0x28] sm:$0xff]  ;;  %s1981_s30 = scalar_lea.vmem %s1980_s28, 256  ;;  %p1982_p11 = scmp.lt.s32.totalorder %s2472_s11, %s1980_s28 }
  0x98   : > { %v357_v25 = vld [vmem:[#allocation8 + $0x70] sm:$0xff]  ;;  %v625_v29 = vld [vmem:[#allocation11 + $0x18] sm:$0xff]  ;;  %v535_v35 = vld [vmem:[#allocation10] sm:$0xff]  ;;  %v1661_v36 = vpack.c.bf16 %v627_v34, %v626_v33  ;;  %p1977_p6 = pnand %p1976_p13, %p2301_p3  ;;  %p1983_p5 = scmp.lt.s32.totalorder %s1981_s30, %s1975_s8 }
  0x99   : > { %v624_v28 = vld [vmem:[#allocation11 + $0x10] sm:$0xff]  ;;  %v1628_v31 = vpack.c.bf16 %v357_v25, %v353_v24  ;;  %1656 = vmatpush3.bf16.msra.mxu1 %v1655_v30  ;;  %v536_v37 = vld [vmem:[#allocation10 + $0x8] sm:$0xff]  ;;  %v629_v39 = vld [vmem:[#allocation11 + $0x38] sm:$0xff] }
  0x9a   : > { %1621 = vmatpush1.bf16.msra.mxu0 %v1620_v15  ;;  %v1658_v32 = vpack.c.bf16 %v625_v29, %v624_v28  ;;  %1657 = vmatprep.subr.bf16.mxu1 %v2108_v1  ;;  %v628_v38 = vld [vmem:[#allocation11 + $0x30] sm:$0xff]  ;;  %v1631_v40 = vpack.c.bf16 %v536_v37, %v535_v35  ;;  %v630_v42 = vld [vmem:[#allocation11 + $0x40] sm:$0xff]  ;;  %v631_v43 = vld [vmem:[#allocation11 + $0x48] sm:$0xff]  ;;  %v367_v15 = vsub.s32 1, %v2401_v14  ;;  %p1978_p10 = pneg %p1977_p6  ;;  %p1984_p9 = por %p1983_p5, %p1982_p11 }
  0x9b   : > { %1623 = vmatprep.subr.bf16.mxu0 %v1622_v16  ;;  %v1664_v41 = vpack.c.bf16 %v629_v39, %v628_v38  ;;  %v1667_v44 = vpack.c.bf16 %v631_v43, %v630_v42  ;;  %v537_v45 = vld [vmem:[#allocation10 + $0x10] sm:$0xff]  ;;  %v538_v46 = vld [vmem:[#allocation10 + $0x18] sm:$0xff]  ;;  %v539_v48 = vld [vmem:[#allocation10 + $0x20] sm:$0xff] }
  0x9c   : > { %v1634_v47 = vpack.c.bf16 %v538_v46, %v537_v45  ;;  %v540_v49 = vld [vmem:[#allocation10 + $0x28] sm:$0xff]  ;;  %v541_v51 = vld [vmem:[#allocation10 + $0x30] sm:$0xff]  ;;  %v542_v52 = vld [vmem:[#allocation10 + $0x38] sm:$0xff]  ;;  %p1985_p0 = pnand %p1984_p9, %p1978_p10 }
  0x9d   : > { %1323 = vmatmul.mubr.msk.f32.vlgmr.msra.gmra.mrb[0].mxu0 %vm381_vm0, %v342_v21  ;;  %1659 = vmatpush3.bf16.msra.mxu1 %v1658_v32  ;;  %v1637_v50 = vpack.c.bf16 %v540_v49, %v539_v48  ;;  %v1640_v53 = vpack.c.bf16 %v542_v52, %v541_v51  ;;  %v543_v54 = vld [vmem:[#allocation10 + $0x40] sm:$0xff]  ;;  %v544_v55 = vld [vmem:[#allocation10 + $0x48] sm:$0xff]  ;;  %v545_v57 = vld [vmem:[#allocation10 + $0x50] sm:$0xff] }
  0x9e   : > { %1625 = vmatpush1.bf16.msra.mxu0 %v1624_v22  ;;  %520 = vmatprep.mubr.f32.mxu0 %v2107_v0  ;;  %v1643_v56 = vpack.c.bf16 %v544_v55, %v543_v54  ;;  %v546_v58 = vld [vmem:[#allocation10 + $0x58] sm:$0xff]  ;;  %v547_v60 = vld [vmem:[#allocation10 + $0x60] sm:$0xff]  ;;  %v548_v61 = vld [vmem:[#allocation10 + $0x68] sm:$0xff] }
  0x9f   : > { %1627 = vmatprep.subr.bf16.mxu0 %v1626_v23  ;;  %1660 = vmatprep.subr.bf16.mxu1 %v2108_v1  ;;  %v1646_v59 = vpack.c.bf16 %v546_v58, %v545_v57  ;;  %v1649_v62 = vpack.c.bf16 %v548_v61, %v547_v60  ;;  %v549_v63 = vld [vmem:[#allocation10 + $0x70] sm:$0xff]  ;;  %v550_v2 = vld [vmem:[#allocation10 + $0x78] sm:$0xff]  ;;  %v634_v7 = vld [vmem:[#allocation11 + $0x60] sm:$0xff]  ;;  %v375_v23 = vsub.s32 3, %v2401_v14 }
  0xa0   : > { %v1652_v3 = vpack.c.bf16 %v550_v2, %v549_v63  ;;  %v632_v4 = vld [vmem:[#allocation11 + $0x50] sm:$0xff]  ;;  %v633_v5 = vld [vmem:[#allocation11 + $0x58] sm:$0xff]  ;;  %v635_v8 = vld [vmem:[#allocation11 + $0x68] sm:$0xff] }
  0xa1   : > { %1662 = vmatpush3.bf16.msra.mxu1 %v1661_v36  ;;  %v1670_v6 = vpack.c.bf16 %v633_v5, %v632_v4  ;;  %v1673_v9 = vpack.c.bf16 %v635_v8, %v634_v7  ;;  %v636_v10 = vld [vmem:[#allocation11 + $0x70] sm:$0xff]  ;;  %v637_v11 = vld [vmem:[#allocation11 + $0x78] sm:$0xff]  ;;  %v799_v19 = vld [vmem:[#allocation11 + $0x100] sm:$0xff] }
  0xa2   : > { %1629 = vmatpush1.bf16.msra.mxu0 %v1628_v31  ;;  %1663 = vmatprep.subr.bf16.mxu1 %v2108_v1  ;;  %v1676_v12 = vpack.c.bf16 %v637_v11, %v636_v10  ;;  %v2407_v16 = vld [vmem:[%s2554_s2] sm:$0xf]  ;;  %v800_v20 = vld [vmem:[#allocation11 + $0x108] sm:$0xff]  ;;  %v802_v27 = vld [vmem:[#allocation11 + $0x118] sm:$0xff] }
  0xa3   : > { %1630 = vmatprep.subr.bf16.mxu0 %v2108_v1  ;;  %v368_v17 = vrot.slane %v2407_v16, %v367_v15  ;;  %v1703_v24 = vpack.c.bf16 %v800_v20, %v799_v19  ;;  %v801_v26 = vld [vmem:[#allocation11 + $0x110] sm:$0xff]  ;;  %v376_v28 = vrot.slane %v2407_v16, %v375_v23  ;;  %v710_v30 = vld [vmem:[#allocation11 + $0x80] sm:$0xff]  ;;  %v711_v32 = vld [vmem:[#allocation11 + $0x88] sm:$0xff] }
  0xa4   : > { %v1706_v29 = vpack.c.bf16 %v802_v27, %v801_v26  ;;  %v803_v33 = vld [vmem:[#allocation11 + $0x120] sm:$0xff]  ;;  %v804_v34 = vld [vmem:[#allocation11 + $0x128] sm:$0xff]  ;;  %v1679_v37 = vpack.c.bf16 %v711_v32, %v710_v30  ;;  %v712_v39 = vld [vmem:[#allocation11 + $0x90] sm:$0xff] }
  0xa5   : > { %1324 = vmatmul.mubr.msk.f32.vlgmr.msra.gmra.mrb[2].mxu0 %vm381_vm0, %v342_v21  ;;  %1665 = vmatpush3.bf16.msra.mxu1 %v1664_v41  ;;  %v1709_v38 = vpack.c.bf16 %v804_v34, %v803_v33  ;;  %v713_v41 = vld [vmem:[#allocation11 + $0x98] sm:$0xff]  ;;  %v805_v42 = vld [vmem:[#allocation11 + $0x130] sm:$0xff]  ;;  %v714_v46 = vld [vmem:[#allocation11 + $0xa0] sm:$0xff] }
  0xa6   : > { %1666 = vmatprep.subr.bf16.mxu1 %v2108_v1  ;;  %1455 = vmatprep.mubr.msk.f32.mxu0 %vm2109_vm1, %v2107_v0  ;;  %v806_v43 = vld [vmem:[#allocation11 + $0x138] sm:$0xff]  ;;  %v807_v48 = vld [vmem:[#allocation11 + $0x140] sm:$0xff]  ;;  %v808_v49 = vld [vmem:[#allocation11 + $0x148] sm:$0xff] }
  0xa7   : > { %v1712_v45 = vpack.c.bf16 %v806_v43, %v805_v42  ;;  %v1715_v51 = vpack.c.bf16 %v808_v49, %v807_v48  ;;  %v716_v52 = vld [vmem:[#allocation11 + $0xb0] sm:$0xff]  ;;  %v810_v55 = vld [vmem:[#allocation11 + $0x158] sm:$0xff]  ;;  %v718_v58 = vld [vmem:[#allocation11 + $0xc0] sm:$0xff]  ;;  %v363_v43 = vsub.s32 0, %v2401_v14 }
  0xa8   : > { %v809_v54 = vld [vmem:[#allocation11 + $0x150] sm:$0xff]  ;;  %v811_v60 = vld [vmem:[#allocation11 + $0x160] sm:$0xff]  ;;  %v812_v61 = vld [vmem:[#allocation11 + $0x168] sm:$0xff] }
  0xa9   : > { %1668 = vmatpush3.bf16.msra.mxu1 %v1667_v44  ;;  %v1682_v44 = vpack.c.bf16 %v713_v41, %v712_v39  ;;  %v1718_v57 = vpack.c.bf16 %v810_v55, %v809_v54  ;;  %v1721_v63 = vpack.c.bf16 %v812_v61, %v811_v60  ;;  %v720_v2 = vld [vmem:[#allocation11 + $0xd0] sm:$0xff]  ;;  %v814_v5 = vld [vmem:[#allocation11 + $0x178] sm:$0xff]  ;;  %v722_v8 = vld [vmem:[#allocation11 + $0xe0] sm:$0xff] }
  0xaa   : > { %1669 = vmatprep.subr.bf16.mxu1 %v2108_v1  ;;  %v813_v4 = vld [vmem:[#allocation11 + $0x170] sm:$0xff]  ;;  %v888_v15 = vld [vmem:[#allocation11 + $0x180] sm:$0xff]  ;;  %v895_v27 = vld [vmem:[#allocation11 + $0x1b8] sm:$0xff] }
  0xab   : > { %1632 = vmatpush3.bf16.xpose.msra.mxu0 %v1631_v40  ;;  %v1724_v7 = vpack.c.bf16 %v814_v5, %v813_v4  ;;  %v724_v11 = vld [vmem:[#allocation11 + $0xf0] sm:$0xff]  ;;  %v892_v23 = vld [vmem:[#allocation11 + $0x1a0] sm:$0xff]  ;;  %v897_v30 = vld [vmem:[#allocation11 + $0x1c8] sm:$0xff] }
  0xac   : > { %1633 = vmatprep.subr.bf16.mxu0 %v2108_v1  ;;  %v890_v20 = vld [vmem:[#allocation11 + $0x190] sm:$0xff]  ;;  %v899_v34 = vld [vmem:[#allocation11 + $0x1d8] sm:$0xff] }
  0xad   : > { %1671 = vmatpush3.bf16.msra.mxu1 %v1670_v6  ;;  %v894_v26 = vld [vmem:[#allocation11 + $0x1b0] sm:$0xff]  ;;  %v903_v41 = vld [vmem:[#allocation11 + $0x1f8] sm:$0xff] }
  0xae   : > { %1672 = vmatprep.subr.bf16.mxu1 %v2108_v1  ;;  %v898_v33 = vld [vmem:[#allocation11 + $0x1d0] sm:$0xff] }
  0xaf   : > { %v902_v39 = vld [vmem:[#allocation11 + $0x1f0] sm:$0xff] }
  0xb0   : > { %v1748_v42 = vpack.c.bf16 %v903_v41, %v902_v39 }
  0xb1   : > { %1674 = vmatpush3.bf16.msra.mxu1 %v1673_v9  ;;  %v723_v9 = vld [vmem:[#allocation11 + $0xe8] sm:$0xff] }
  0xb2   : > { %1675 = vmatprep.subr.bf16.mxu1 %v2108_v1  ;;  %v1697_v10 = vpack.c.bf16 %v723_v9, %v722_v8 }
  0xb3   : > { %1635 = vmatpush3.bf16.xpose.msra.mxu0 %v1634_v47  ;;  %v715_v47 = vld [vmem:[#allocation11 + $0xa8] sm:$0xff] }
  0xb4   : > { %1636 = vmatprep.subr.bf16.mxu0 %v2108_v1 }
  0xb5   : > { %1677 = vmatpush3.bf16.msra.mxu1 %v1676_v12  ;;  %v725_v12 = vld [vmem:[#allocation11 + $0xf8] sm:$0xff] }
  0xb6   : > { %1678 = vmatprep.subr.bf16.mxu1 %v2108_v1  ;;  %v1700_v13 = vpack.c.bf16 %v725_v12, %v724_v11 }
  0xbb   : > { %1638 = vmatpush3.bf16.xpose.msra.mxu0 %v1637_v50  ;;  %v1685_v50 = vpack.c.bf16 %v715_v47, %v714_v46 }
  0xbc   : > { %1639 = vmatprep.subr.bf16.mxu0 %v2108_v1 }
  0xc3   : > { %1641 = vmatpush3.bf16.xpose.msra.mxu0 %v1640_v53  ;;  %v717_v53 = vld [vmem:[#allocation11 + $0xb8] sm:$0xff] }
  0xc4   : > { %1642 = vmatprep.subr.bf16.mxu0 %v2108_v1 }
  0xcb   : > { %1644 = vmatpush3.bf16.xpose.msra.mxu0 %v1643_v56  ;;  %v1688_v56 = vpack.c.bf16 %v717_v53, %v716_v52 }
  0xcc   : > { %1645 = vmatprep.subr.bf16.mxu0 %v2108_v1 }
  0xd3   : > { %1647 = vmatpush3.bf16.xpose.msra.mxu0 %v1646_v59  ;;  %v719_v59 = vld [vmem:[#allocation11 + $0xc8] sm:$0xff] }
  0xd4   : > { %1648 = vmatprep.subr.bf16.mxu0 %v2108_v1 }
  0xdb   : > { %1650 = vmatpush3.bf16.xpose.msra.mxu0 %v1649_v62  ;;  %v1691_v62 = vpack.c.bf16 %v719_v59, %v718_v58 }
  0xdc   : > { %1651 = vmatprep.subr.bf16.mxu0 %v2108_v1 }
  0xe3   : > { %1653 = vmatpush3.bf16.xpose.msra.mxu0 %v1652_v3  ;;  %v721_v3 = vld [vmem:[#allocation11 + $0xd8] sm:$0xff] }
  0xe4   : > { %1702 = vmatprep.subr.bf16.mxu0 %v2108_v1  ;;  %v1694_v6 = vpack.c.bf16 %v721_v3, %v720_v2 }
 0x170   : > { %v2410_v18 = vpop.f32.mrb[0].mxu0 }
 0x171   : > { %v453_v21 = vpop.f32.mrb[1].mxu0 }
 0x172   : > { %v454_v22 = vadd.f32 %v453_v21, %v368_v17  ;;  %v889_v17 = vld [vmem:[#allocation11 + $0x188] sm:$0xff]  ;;  %v891_v21 = vld [vmem:[#allocation11 + $0x198] sm:$0xff] }
 0x173   : > { %v1727_v19 = vpack.c.bf16 %v889_v17, %v888_v15 }
 0x174   : > { %v528_v25 = vmax.f32 %v454_v22, 0.0  ;;  %v1730_v22 = vpack.c.bf16 %v891_v21, %v890_v20 }
 0x176   : > { %1456 = vmatmul.mubr.f32.vlgmr.msra.gmra.mrb[4].mxu0 %v528_v25 }
 0x177   : > { %1704 = vmatpush3.bf16.msra.mxu0 %v1703_v24  ;;  %1560 = vmatprep.mubr.msk.f32.mxu0 %vm2109_vm1, %v2107_v0  ;;  %v893_v24 = vld [vmem:[#allocation11 + $0x1a8] sm:$0xff] }
 0x178   : > { %v2416_v31 = vpop.f32.mrb[2].mxu0  ;;  %1705 = vmatprep.subr.bf16.mxu0 %v2108_v1  ;;  %v1733_v25 = vpack.c.bf16 %v893_v24, %v892_v23 }
 0x179   : > { %v524_v35 = vpop.f32.mrb[3].mxu0 }
 0x17a   : > { %v525_v36 = vadd.f32 %v524_v35, %v376_v28  ;;  %v1736_v28 = vpack.c.bf16 %v895_v27, %v894_v26  ;;  %v1742_v35 = vpack.c.bf16 %v899_v34, %v898_v33 }
 0x17b   : > { %1707 = vmatpush3.bf16.msra.mxu0 %v1706_v29  ;;  %v896_v29 = vld [vmem:[#allocation11 + $0x1c0] sm:$0xff] }
 0x17c   : > { %v2419_v40 = vmax.f32 %v525_v36, 0.0  ;;  %1708 = vmatprep.subr.bf16.mxu0 %v2108_v1  ;;  %v1739_v32 = vpack.c.bf16 %v897_v30, %v896_v29  ;;  %v900_v36 = vld [vmem:[#allocation11 + $0x1e0] sm:$0xff] }
 0x17e   : > { %1491 = vmatmul.mubr.f32.vlgmr.msra.gmra.mrb[0].mxu1 %v2419_v40 }
 0x17f   : > { %1680 = vmatpush3.bf16.msra.mxu1 %v1679_v37  ;;  %1710 = vmatpush3.bf16.msra.mxu0 %v1709_v38  ;;  %v901_v37 = vld [vmem:[#allocation11 + $0x1e8] sm:$0xff] }
 0x180   : > { %1681 = vmatprep.subr.bf16.mxu1 %v2108_v1  ;;  %1711 = vmatprep.subr.bf16.mxu0 %v2108_v1  ;;  %v1745_v38 = vpack.c.bf16 %v901_v37, %v900_v36 }
 0x181   : > { %1525 = vmatprep.mubr.msk.f32.mxu1 %vm2109_vm1, %v2107_v0 }
 0x183   : > { %1683 = vmatpush3.bf16.msra.mxu1 %v1682_v44  ;;  %1713 = vmatpush3.bf16.msra.mxu0 %v1712_v45  ;;  %v364_v44 = vrot.slane %v2407_v16, %v363_v43 }
 0x184   : > { %1684 = vmatprep.subr.bf16.mxu1 %v2108_v1  ;;  %1714 = vmatprep.subr.bf16.mxu0 %v2108_v1 }
 0x185   : > { %v452_v45 = vadd.f32 %v2410_v18, %v364_v44  ;;  %v371_v18 = vsub.s32 2, %v2401_v14 }
 0x187   : > { %1686 = vmatpush3.bf16.msra.mxu1 %v1685_v50  ;;  %1716 = vmatpush3.bf16.msra.mxu0 %v1715_v51  ;;  %v527_v48 = vmax.f32 %v452_v45, 0.0  ;;  %v372_v54 = vrot.slane %v2407_v16, %v371_v18 }
 0x188   : > { %1687 = vmatprep.subr.bf16.mxu1 %v2108_v1  ;;  %1717 = vmatprep.subr.bf16.mxu0 %v2108_v1 }
 0x189   : > { %v523_v58 = vadd.f32 %v2416_v31, %v372_v54 }
 0x18b   : > { %1689 = vmatpush3.bf16.msra.mxu1 %v1688_v56  ;;  %1719 = vmatpush3.bf16.msra.mxu0 %v1718_v57  ;;  %v529_v59 = vmax.f32 %v523_v58, 0.0 }
 0x18c   : > { %1690 = vmatprep.subr.bf16.mxu1 %v2108_v1  ;;  %1720 = vmatprep.subr.bf16.mxu0 %v2108_v1 }
 0x18f   : > { %1692 = vmatpush3.bf16.msra.mxu1 %v1691_v62  ;;  %1722 = vmatpush3.bf16.msra.mxu0 %v1721_v63 }
 0x190   : > { %1693 = vmatprep.subr.bf16.mxu1 %v2108_v1  ;;  %1723 = vmatprep.subr.bf16.mxu0 %v2108_v1 }
 0x193   : > { %1695 = vmatpush3.bf16.msra.mxu1 %v1694_v6  ;;  %1725 = vmatpush3.bf16.msra.mxu0 %v1724_v7 }
 0x194   : > { %1696 = vmatprep.subr.bf16.mxu1 %v2108_v1  ;;  %1598 = vmatprep.subr.mxu0 %v2107_v0 }
 0x196   : > { %1561 = vmatmul.mubr.f32.vlgmr.msra.gmra.mrb[6].mxu0 %v2419_v40 }
 0x197   : > { %1698 = vmatpush3.bf16.msra.mxu1 %v1697_v10  ;;  %1600 = vmatprep.mubr.msk.f32.mxu0 %vm2109_vm1, %v2107_v0 }
 0x198   : > { %1699 = vmatprep.subr.bf16.mxu1 %v2108_v1 }
 0x19b   : > { %1701 = vmatpush3.bf16.msra.mxu1 %v1700_v13 }
 0x19c   : > { %1726 = vmatprep.subr.bf16.mxu1 %v2108_v1 }
 0x19e   : > { %1526 = vmatmul.mubr.f32.vlgmr.msra.gmra.mrb[2].mxu1 %v2419_v40 }
 0x19f   : > { %1728 = vmatpush3.bf16.msra.mxu1 %v1727_v19  ;;  %1595 = vmatprep.mubr.msk.f32.mxu1 %vm2109_vm1, %v2107_v0 }
 0x1a0   : > { %1729 = vmatprep.subr.bf16.mxu1 %v2108_v1 }
 0x1a3   : > { %1731 = vmatpush3.bf16.msra.mxu1 %v1730_v22 }
 0x1a4   : > { %1732 = vmatprep.subr.bf16.mxu1 %v2108_v1 }
 0x1a7   : > { %1734 = vmatpush3.bf16.msra.mxu1 %v1733_v25 }
 0x1a8   : > { %1735 = vmatprep.subr.bf16.mxu1 %v2108_v1 }
 0x1ab   : > { %1737 = vmatpush3.bf16.msra.mxu1 %v1736_v28 }
 0x1ac   : > { %1738 = vmatprep.subr.bf16.mxu1 %v2108_v1 }
 0x1af   : > { %1740 = vmatpush3.bf16.msra.mxu1 %v1739_v32 }
 0x1b0   : > { %1741 = vmatprep.subr.bf16.mxu1 %v2108_v1 }
 0x1b3   : > { %1743 = vmatpush3.bf16.msra.mxu1 %v1742_v35 }
 0x1b4   : > { %1744 = vmatprep.subr.bf16.mxu1 %v2108_v1 }
 0x1b7   : > { %1746 = vmatpush3.bf16.msra.mxu1 %v1745_v38 }
 0x1b8   : > { %1747 = vmatprep.subr.bf16.mxu1 %v2108_v1 }
 0x1bb   : > { %1749 = vmatpush3.bf16.msra.mxu1 %v1748_v42 }
 0x1bc   : > { %1750 = vmatprep.subr.bf16.mxu1 %v2108_v1 }
 0x1be   : > { %1596 = vmatmul.mubr.f32.vlgmr.msra.gmra.mrb[4].mxu1 %v2419_v40 }
 0x1bf   : > { %1611 = vmatprep.mubr.msk.f32.mxu1 %vm2109_vm1, %v2107_v0 }
 0x249   : > { %v617_v46 = vpop.f32.mrb[4].mxu0 }
 0x24a   : > { %v1457_v47 = vpop.f32.mrb[5].mxu0  ;;  %1599 = vmatpush3.xpose.msra.mxu0 %v617_v46 }
 0x24d   : > { %1601 = vmatmul.mubr.f32.vlgmr.msra.gmra.mrb[8].mxu0 %v527_v48 }
 0x251   : > { %v704_v49 = vpop.f32.mrb[0].mxu1 }
 0x252   : > { %v1492_v50 = vpop.f32.mrb[1].mxu1 }
 0x269   : > { %v881_v51 = vpop.f32.mrb[6].mxu0 }
 0x26a   : > { %v1562_v52 = vpop.f32.mrb[7].mxu0 }
 0x271   : > { %v792_v40 = vpop.f32.mrb[2].mxu1 }
 0x272   : > { %v1751_v53 = vpack.c.bf16 %v792_v40, %v704_v49  ;;  %v1527_v0 = vpop.f32.mrb[3].mxu1 }
 0x274   : > { %1752 = vmatpush3.bf16.xpose.msra.mxu1 %v1751_v53 }
 0x275   : > { %1753 = vmatprep.subr.bf16.mxu1 %v2108_v1 }
 0x291   : > { %v970_v55 = vpop.f32.mrb[4].mxu1 }
 0x292   : > { %v1754_v56 = vpack.c.bf16 %v970_v55, %v881_v51  ;;  %v1597_v57 = vpop.f32.mrb[5].mxu1 }
 0x294   : > { %1755 = vmatpush3.bf16.xpose.msra.mxu1 %v1754_v56 }
 0x29b   : > { %1612 = vmatmul.mubr.f32.vlgmr.msra.gmra.mrb[6].mxu1 %v529_v59 }
 0x320   : > { %v1048_v1 = vpop.f32.mrb[8].mxu0 }
 0x321   : > { %1053 = vst.msk [vmem:[%s330_s10] sm:$0xff] %vm1052_vm2, %v1048_v1  ;;  %v1602_v14 = vpop.f32.mrb[9].mxu0 }
 0x322   : > { %1988 = shalt.err (!%p1985_p0)
}
 0x323   : > { %s1989_s18 = scalar_lea.hbm %s2470_s12, 128  ;;  %s1993_s7 = scalar_lea.hbm %s2557_s5, 256 }
 0x324   : > { %p1990_p4 = scmp.ne.s32.totalorder %s2470_s12, %s1989_s18  ;;  %p1994_p1 = scmp.lt.u32.totalorder %s2470_s12, %s2557_s5 }
 0x325   : > { %p1995_p12 = scmp.lt.u32.totalorder %s1993_s7, %s1989_s18  ;;  %p1997_p13 = scmp.lt.u32.totalorder %s1989_s18, %s2470_s12 }
 0x326   : > { %p1991_p8 = pnand %p1990_p4, %p2301_p3 }
 0x327   : > { %p1996_p7 = por %p1995_p12, %p1994_p1 }
 0x328   : > { %p1992_p2 = pneg %p1991_p8 }
 0x329   : > { %p1998_p6 = por %p1997_p13, %p1996_p7 }
 0x32b   : > { %p1999_p10 = pnand %p1998_p6, %p1992_p2 }
 0x32d   : > { %2002 = shalt.err (!%p1999_p10)
}
 0x32e   : > { %1770 = dma.vmem_to_hbm [thread:$0]  (%p2301_p3), %s2472_s11, 128, %s2470_s12, %s1131_s19  }
 0x32f   : > { %s337_s13 = scalar_lea.vmem [#allocation14], %s2357_s20  ;;  %s2502_s30 = scalar_lea.hbm %s2558_s6, %s1327_s9 }
 0x330   : > { %s1164_s8 = sshll.u32 %s337_s13, 4  ;;  %s1136_s18 = scalar_lea.sflag [#allocation15], %s2354_s15  ;;  %s2504_s8 = int_to_ptr.vmem [resolvable:$true] %s1164_s8 }
 0x331   : > { %s2003_s21 = scalar_lea.vmem %s2504_s8, 128  ;;  %s2111_s24 = smov [#allocation14]  }
 0x332   : > { %p2004_p11 = scmp.ne.s32.totalorder %s2504_s8, %s2003_s21  ;;  %s2007_s20 = sshll.u32 %s2111_s24, 4  ;;  %s2008_s20 = int_to_ptr.vmem [resolvable:$false] %s2007_s20 }
 0x333   : > { %s2009_s9 = scalar_lea.vmem %s2008_s20, 256  ;;  %p2010_p0 = scmp.lt.s32.totalorder %s2504_s8, %s2008_s20 }
 0x334   : > { %p2005_p5 = pnand %p2004_p11, %p2301_p3  ;;  %p2011_p4 = scmp.lt.s32.totalorder %s2009_s9, %s2003_s21 }
 0x336   : > { %p2006_p9 = pneg %p2005_p5  ;;  %p2012_p8 = por %p2011_p4, %p2010_p0 }
 0x338   : > { %p2013_p2 = pnand %p2012_p8, %p2006_p9 }
 0x36e   : > { %v1124_v16 = vpop.f32.mrb[6].mxu1 }
 0x36f   : > { %1129 = vst.msk [vmem:[%s337_s13] sm:$0xff] %vm381_vm0, %v1124_v16  ;;  %v1613_v31 = vpop.f32.mrb[7].mxu1 }
 0x370   : > { %2016 = shalt.err (!%p2013_p2)
}
 0x371   : > { %s2017_s15 = scalar_lea.hbm %s2502_s30, 128  ;;  %s2021_s19 = scalar_lea.hbm %s2558_s6, 256 }
 0x372   : > { %p2018_p1 = scmp.ne.s32.totalorder %s2502_s30, %s2017_s15  ;;  %p2022_p13 = scmp.lt.u32.totalorder %s2502_s30, %s2558_s6 }
 0x373   : > { %p2023_p6 = scmp.lt.u32.totalorder %s2021_s19, %s2017_s15  ;;  %p2025_p11 = scmp.lt.u32.totalorder %s2017_s15, %s2502_s30 }
 0x374   : > { %p2019_p12 = pnand %p2018_p1, %p2301_p3 }
 0x375   : > { %p2024_p10 = por %p2023_p6, %p2022_p13 }
 0x376   : > { %p2020_p7 = pneg %p2019_p12 }
 0x377   : > { %p2026_p5 = por %p2025_p11, %p2024_p10 }
 0x379   : > { %p2027_p9 = pnand %p2026_p5, %p2020_p7 }
 0x37b   : > { %2030 = shalt.err (!%p2027_p9)
}
 0x37c   : > { %1771 = dma.vmem_to_hbm [thread:$0]  (%p2301_p3), %s2504_s8, 128, %s2502_s30, %s1136_s18  }
 0x37d PF: > { %s2583_s10 = sld [smem:[#allocation21_spill]]  ;;  %s2584_s14 = sld [smem:[#allocation22_spill]] }
 0x37e   : > { %p2586_p4 = scmp.ge.s32.totalorder %s2097_s26, 2 }
 0x383   : > { %s1176_s13 = sand.u32 1, %s2583_s10   ;;  %p2585_p0 = scmp.ne.s32.totalorder %s2584_s14, 0 }
 0x384   : > { %s1177_s27 = scalar_lea.sflag [#allocation7], %s1176_s13 }
 0x385   : > { %p1789_p8 = pnand %p2586_p4, %p2585_p0 }
 0x387   : > { %2068 = dma.done.wait (!%p1789_p8), %s1177_s27, 128  }
 0x388   : > { %2070 = vsyncadd (!%p1789_p8), %s1177_s27, 4294967168  ;;  %s1186_s28 = scalar_lea.sflag [#allocation15], %s1176_s13 }
 0x389   : > { %2072 = dma.done.wait (!%p1789_p8), %s1186_s28, 128  }
 0x38a   : > { %2074 = vsyncadd (!%p1789_p8), %s1186_s28, 4294967168  ;;  %s28_s26 = sadd.s32 1, %s2097_s26   ;;  %s2587_s21 = smov %s2081_s22 }
 0x38b   : > { %p25_p2 = scmp.ge.s32.totalorder %s28_s26, 4   ;;  %s2588_s22 = smov %s2085_s23 }
 0x38c   : > { %s2589_s23 = smov %s2310_s17  ;;  %s2590_s24 = smov %s2093_s25 }
 0x38d   : > { %s2591_s25 = smov %s2593_s1  ;;  %27 = sbr.rel (!%p25_p2) target bundleno = 12 (0xc), region = 125 }
 0x394   :  { %1191 = vsyncpa [#allocation6], 1 }
 0x395   :  { %1193 = vsyncpa [#allocation6 + $0x1], 1 }
 0x396   :  { %1194 = vsyncpa [#allocation9], 1 }
 0x397   :  { %1195 = vsyncpa [#allocation12], 1 }
 0x398   :  { %1196 = vsyncpa [#allocation7], 1 }
 0x399   :  { %1198 = vsyncpa [#allocation7 + $0x1], 1 }
 0x39a   :  { %1199 = vsyncpa [#allocation15], 1 }
 0x39b   :  { %1201 = vsyncpa [#allocation15 + $0x1], 1 }

</bundles_post_ra>
